<compile_context>
chip_gen: v6e
topology: v6e:2x2x1
jax: 0.10.0
libtpu: 0.0.40
codegen_flags: <defaults>
</compile_context>

<pallas_src>
import functools
from enum import Enum

import jax
import jax.numpy as jnp
from jax.experimental import pallas as pl
from jax.experimental.pallas import tpu as pltpu


class CFA(Enum):
    BG = 0
    GB = 1
    RG = 2
    GR = 3


# Per-grid-step (input + output) tile budget; Pallas double-buffers each
# operand, so pipelined VMEM usage is ~2x this.
_TILE_BUDGET_BYTES = 8 * 1024 * 1024
_MAX_FUSED_LANES = 1024
_MIN_VMEM_LIMIT_BYTES = 32 * 1024 * 1024
_MAX_VMEM_LIMIT_BYTES = 100 * 1024 * 1024


def _largest_divisor(n: int, cap: int, multiple: int = 1) -> int:
    """Largest d <= cap with n % d == 0 and d % multiple == 0, else 0."""
    cap = min(cap, n)
    for d in range(cap, 0, -1):
        if n % d == 0 and d % multiple == 0:
            return d
    return 0


def _pick_row_fold(H: int, W: int):
    """Power-of-two row fold RF so the lane axis becomes RF*W (>=128)."""
    if W < 2 or W >= 128 or (W & (W - 1)) != 0:
        return None
    best = None
    rf = 2
    while rf * W <= _MAX_FUSED_LANES:
        if rf * W >= 128 and H % rf == 0:
            best = rf
        rf *= 2
    return best


def _tile_rows(R: int, row_cap: int, min_mult: int):
    """Pick a row-tile size (multiple of min_mult or == R) and grid extent."""
    if R <= row_cap:
        return R, 1
    d = _largest_divisor(R, row_cap, min_mult)
    if d:
        return d, R // d
    tr = max(min_mult, (row_cap // min_mult) * min_mult)
    return tr, pl.cdiv(R, tr)


def _masks(cfa: CFA, row_even, col_even):
    row_odd = jnp.logical_not(row_even)
    col_odd = jnp.logical_not(col_even)
    if cfa == CFA.BG:
        return row_even & col_even, row_odd & col_odd
    if cfa == CFA.GB:
        return row_even & col_odd, row_odd & col_even
    if cfa == CFA.RG:
        return row_odd & col_odd, row_even & col_even
    if cfa == CFA.GR:
        return row_odd & col_even, row_even & col_odd
    raise ValueError(f"Unsupported CFA: {cfa}")


def _rgb_to_raw_kernel(img_ref, out_ref, *, cfa: CFA, fused_w, tile_r, tile_c):
    # img_ref: (NB, 3, TR, TC) VMEM block, out_ref: (NB, 1, TR, TC) VMEM block.
    r = img_ref[:, 0, :, :]
    g = img_ref[:, 1, :, :]
    b = img_ref[:, 2, :, :]
    shape = r.shape  # (NB, TR, TC)

    if fused_w is not None:
        # Lane axis = row_fold * W, with W (=fused_w) a power of two and the
        # row fold even, so: col parity == lane & 1, row parity == bit `W`.
        lane = jax.lax.broadcasted_iota(jnp.int32, shape, 2)
        col_even = (lane & 1) == 0
        row_even = (lane & fused_w) == 0
    else:
        row = pl.program_id(1) * tile_r + jax.lax.broadcasted_iota(jnp.int32, shape, 1)
        col = pl.program_id(2) * tile_c + jax.lax.broadcasted_iota(jnp.int32, shape, 2)
        row_even = (row & 1) == 0
        col_even = (col & 1) == 0

    r_mask, b_mask = _masks(cfa, row_even, col_even)
    out = jnp.where(r_mask, r, g)
    out = jnp.where(b_mask, b, out)
    out_ref[:, 0, :, :] = out


def rgb_to_raw(image: jax.Array, cfa: CFA) -> jax.Array:
    """image: [*, 3, H, W] -> raw: [*, 1, H, W] (same dtype)."""
    if image.ndim < 3 or image.shape[-3] != 3:
        raise ValueError(f"Input size must have a shape of [*, 3, H, W]. Got: {image.shape}")

    lead = image.shape[:-3]
    H, W = image.shape[-2], image.shape[-1]
    itemsize = jnp.dtype(image.dtype).itemsize
    min_sublane = max(8, 32 // max(1, itemsize))  # 8 f32, 16 bf16, 32 int8

    x = image.reshape((-1, 3, H, W))
    N = x.shape[0]

    rf = _pick_row_fold(H, W)
    if rf is not None:
        # Fold rf rows into the lane axis (free reshape) -> lane-dense stores.
        R, C = H // rf, rf * W
        x = x.reshape((N, 3, R, C))
        fused_w = W
    else:
        R, C = H, W
        fused_w = None

    # --- column tiling: prefer full-width slabs (contiguous DMA rows). ---
    per_row_bytes = 4 * C * itemsize  # 3 input planes + 1 output plane per row
    if per_row_bytes * min_sublane <= _TILE_BUDGET_BYTES or C % 128 != 0:
        TC, grid_c = C, 1  # full width (legal block: equals array dim)
    else:
        # Split columns into 128-lane multiples that divide C.
        n128 = C // 128
        cap = max(1, _TILE_BUDGET_BYTES // (4 * 128 * itemsize * min_sublane))
        TC = 128 * max(1, _largest_divisor(n128, cap))
        grid_c = C // TC

    # --- row tiling within the per-step budget. ---
    row_cap = max(min_sublane, _TILE_BUDGET_BYTES // (4 * TC * itemsize))
    row_cap = min(row_cap, 4096)
    TR, grid_r = _tile_rows(R, row_cap, min_sublane)

    # --- fold several small images into one grid step (amortize step cost). ---
    if grid_r == 1 and grid_c == 1 and N > 1:
        per_image = 4 * TR * TC * itemsize
        nb = _largest_divisor(N, min(4096, max(1, _TILE_BUDGET_BYTES // per_image))) or 1
    else:
        nb = 1
    grid_n = N // nb

    tile_bytes = 4 * nb * TR * TC * itemsize
    vmem_limit = min(_MAX_VMEM_LIMIT_BYTES,
                     max(_MIN_VMEM_LIMIT_BYTES, 2 * tile_bytes + (1 << 20)))

    kernel = functools.partial(
        _rgb_to_raw_kernel, cfa=cfa, fused_w=fused_w, tile_r=TR, tile_c=TC
    )
    out = pl.pallas_call(
        kernel,
        out_shape=jax.ShapeDtypeStruct((N, 1, R, C), image.dtype),
        grid_spec=pltpu.PrefetchScalarGridSpec(
            num_scalar_prefetch=0,
            grid=(grid_n, grid_r, grid_c),
            in_specs=[pl.BlockSpec((nb, 3, TR, TC), lambda n, r, c: (n, 0, r, c))],
            out_specs=pl.BlockSpec((nb, 1, TR, TC), lambda n, r, c: (n, 0, r, c)),
        ),
        compiler_params=pltpu.CompilerParams(
            dimension_semantics=("parallel", "parallel", "parallel"),
            vmem_limit_bytes=vmem_limit,
        ),
    )(x)
    return out.reshape(lead + (1, H, W))


class RgbToRaw:
    """Pallas counterpart of the PyTorch RgbToRaw module."""

    def __init__(self, cfa: CFA):
        self.cfa = cfa

    def __call__(self, image: jax.Array) -> jax.Array:
        return rgb_to_raw(image, cfa=self.cfa)


def _reference_rgb_to_raw(image: jax.Array, cfa: CFA) -> jax.Array:
    # Pure-JAX reference mirroring the PyTorch slicing semantics.
    out = image[..., 1:2, :, :]
    H, W = image.shape[-2], image.shape[-1]
    row = jnp.arange(H)[:, None]
    col = jnp.arange(W)[None, :]
    re, ce = (row % 2) == 0, (col % 2) == 0
    if cfa == CFA.BG:
        rm, bm = re & ce, (~re) & (~ce)
    elif cfa == CFA.GB:
        rm, bm = re & (~ce), (~re) & ce
    elif cfa == CFA.RG:
        rm, bm = (~re) & (~ce), re & ce
    else:  # GR
        rm, bm = (~re) & ce, re & (~ce)
    out = jnp.where(rm, image[..., 0:1, :, :], out)
    out = jnp.where(bm, image[..., 2:3, :, :], out)
    return out


if __name__ == "__main__":
    ok = True

    # Primary shape (exercises the lane-dense row-fold path + batch folding).
    x = jax.random.uniform(jax.random.PRNGKey(0), (2, 3, 16, 16), dtype=jnp.float32)
    for cfa in (CFA.BG, CFA.GB, CFA.RG, CFA.GR):
        raw = jax.block_until_ready(RgbToRaw(cfa)(x))
        assert raw.shape == (2, 1, 16, 16), raw.shape
        if not jnp.allclose(raw, _reference_rgb_to_raw(x, cfa)):
            ok = False

    # Non-power-of-two width -> plain full-width tiling path.
    x2 = jax.random.uniform(jax.random.PRNGKey(1), (2, 3, 12, 20), dtype=jnp.float32)
    raw2 = jax.block_until_ready(RgbToRaw(CFA.GB)(x2))
    if raw2.shape != (2, 1, 12, 20) or not jnp.allclose(raw2, _reference_rgb_to_raw(x2, CFA.GB)):
        ok = False

    # Width that is a multiple of 128 -> lane-dense full-width path.
    x3 = jax.random.uniform(jax.random.PRNGKey(2), (2, 3, 8, 128), dtype=jnp.float32)
    raw3 = jax.block_until_ready(RgbToRaw(CFA.RG)(x3))
    if raw3.shape != (2, 1, 8, 128) or not jnp.allclose(raw3, _reference_rgb_to_raw(x3, CFA.RG)):
        ok = False

    if ok:
        print("KERNEL_OK")
</pallas_src>

<mosaic_0001>
module attributes {stable_mosaic.version = 11 : i64} {
  func.func @_rgb_to_raw_kernel(%arg0: i32, %arg1: i32, %arg2: i32, %arg3: memref<2x3x1x256xf32, #tpu.memory_space<vmem>>, %arg4: memref<2x1x1x256xf32, #tpu.memory_space<vmem>>) attributes {dimension_semantics = [#tpu.dimension_semantics<parallel>, #tpu.dimension_semantics<parallel>, #tpu.dimension_semantics<parallel>], iteration_bounds = array<i64: 1, 1, 1>, scalar_prefetch = 0 : i64, scratch_operands = 0 : i64, tpu.core_type = #tpu.core_type<tc>, window_params = [{transform_indices = @transform_0, window_bounds = array<i64: 2, 3, 1, 256>}, {transform_indices = @transform_1, window_bounds = array<i64: 2, 1, 1, 256>}]} {
    %c0 = arith.constant 0 : index
    %c0_0 = arith.constant 0 : index
    %c0_1 = arith.constant 0 : index
    %c0_2 = arith.constant 0 : index
    %0 = vector.load %arg3[%c0, %c0_0, %c0_1, %c0_2] : memref<2x3x1x256xf32, #tpu.memory_space<vmem>>, vector<2x1x1x256xf32>
    %1 = vector.shape_cast %0 : vector<2x1x1x256xf32> to vector<2x1x256xf32>
    %c0_3 = arith.constant 0 : index
    %c1 = arith.constant 1 : index
    %c0_4 = arith.constant 0 : index
    %c0_5 = arith.constant 0 : index
    %2 = vector.load %arg3[%c0_3, %c1, %c0_4, %c0_5] : memref<2x3x1x256xf32, #tpu.memory_space<vmem>>, vector<2x1x1x256xf32>
    %3 = vector.shape_cast %2 : vector<2x1x1x256xf32> to vector<2x1x256xf32>
    %c0_6 = arith.constant 0 : index
    %c2 = arith.constant 2 : index
    %c0_7 = arith.constant 0 : index
    %c0_8 = arith.constant 0 : index
    %4 = vector.load %arg3[%c0_6, %c2, %c0_7, %c0_8] : memref<2x3x1x256xf32, #tpu.memory_space<vmem>>, vector<2x1x1x256xf32>
    %5 = vector.shape_cast %4 : vector<2x1x1x256xf32> to vector<2x1x256xf32>
    %6 = tpu.iota {dimensions = array<i32: 2>} : vector<2x1x256xi32>
    %c1_i32 = arith.constant 1 : i32
    %7 = vector.broadcast %c1_i32 : i32 to vector<2x1x256xi32>
    %8 = arith.andi %6, %7 : vector<2x1x256xi32>
    %c0_i32 = arith.constant 0 : i32
    %9 = vector.broadcast %c0_i32 : i32 to vector<2x1x256xi32>
    %10 = arith.cmpi eq, %8, %9 : vector<2x1x256xi32>
    %c16_i32 = arith.constant 16 : i32
    %11 = vector.broadcast %c16_i32 : i32 to vector<2x1x256xi32>
    %12 = arith.andi %6, %11 : vector<2x1x256xi32>
    %c0_i32_9 = arith.constant 0 : i32
    %13 = vector.broadcast %c0_i32_9 : i32 to vector<2x1x256xi32>
    %14 = arith.cmpi eq, %12, %13 : vector<2x1x256xi32>
    %cst = arith.constant dense<true> : vector<2x1x256xi1>
    %15 = arith.xori %14, %cst : vector<2x1x256xi1>
    %cst_10 = arith.constant dense<true> : vector<2x1x256xi1>
    %16 = arith.xori %10, %cst_10 : vector<2x1x256xi1>
    %17 = arith.andi %14, %10 : vector<2x1x256xi1>
    %18 = arith.andi %15, %16 : vector<2x1x256xi1>
    %19 = arith.select %17, %1, %3 : vector<2x1x256xi1>, vector<2x1x256xf32>
    %20 = arith.select %18, %5, %19 : vector<2x1x256xi1>, vector<2x1x256xf32>
    %c0_11 = arith.constant 0 : index
    %c0_12 = arith.constant 0 : index
    %c0_13 = arith.constant 0 : index
    %c0_14 = arith.constant 0 : index
    %21 = vector.load %arg4[%c0_11, %c0_12, %c0_13, %c0_14] : memref<2x1x1x256xf32, #tpu.memory_space<vmem>>, vector<2x1x1x256xf32>
    %22 = vector.shape_cast %21 : vector<2x1x1x256xf32> to vector<2x1x256xf32>
    %23 = vector.shape_cast %20 : vector<2x1x256xf32> to vector<2x1x1x256xf32>
    tpu.vector_store %arg4[%c0_11, %c0_12, %c0_13, %c0_14], %23 {strides = array<i32>} : memref<2x1x1x256xf32, #tpu.memory_space<vmem>>, vector<2x1x1x256xf32>,
    return
  }
  func.func @transform_0(%arg0: i32, %arg1: i32, %arg2: i32) -> (i32, i32, i32, i32) {
    %c0_i32 = arith.constant 0 : i32
    %c0_i32_0 = arith.constant 0 : i32
    return %arg0, %c0_i32, %arg1, %arg2 : i32, i32, i32, i32
  }
  func.func @transform_1(%arg0: i32, %arg1: i32, %arg2: i32) -> (i32, i32, i32, i32) {
    %c0_i32 = arith.constant 0 : i32
    %c0_i32_0 = arith.constant 0 : i32
    return %arg0, %c0_i32, %arg1, %arg2 : i32, i32, i32, i32
  }
}

</mosaic_0001>

<bundles_post_ra>
// kernel: tpu_custom_call.1
= control target key start
LH: loop header
LB: loop body
LE: loop exit
PB: predicated region body
PF: predicated region fallthrough
CT: control target
= control target key end

     0   :  { %6 = vsyncpa [#allocation3], 0  ;;  %s321_s0 = inlined_call_operand.hbm [shape: f32[2,3,1,256], index: 0, kind: input, shape index: {}]   ;;  %s322_s1 = inlined_call_operand.hbm [shape: f32[2,1,1,256], index: 1, kind: output, shape index: {}]  }
   0x1   :  { %7 = vsyncpa [#allocation4], 0  ;;  %s233_s6 = smov [#allocation2]  }
   0x2   :  { %s13_s7 = sshll.u32 %s233_s6, 4  ;;  %s14_s7 = int_to_ptr.vmem [resolvable:$true] %s13_s7 }
   0x3   :  { %s197_s8 = scalar_lea.vmem %s14_s7, 192  ;;  %p202_p1 = scmp.lt.s32.totalorder %s14_s7, %s14_s7 }
   0x4   :  { %p198_p0 = scmp.ne.s32.totalorder %s14_s7, %s197_s8  ;;  %p203_p2 = scmp.lt.s32.totalorder %s197_s8, %s197_s8 }
   0x6   :  { %p204_p3 = por %p203_p2, %p202_p1 }
   0x8   :  { %p205_p4 = pnand %p204_p3, %p198_p0 }
   0xa   :  { %208 = shalt.err (!%p205_p4)
}
   0xb   :  { %s234_s9 = smov 32   ;;  %s235_s10 = smov 2  }
   0xc   :  { %19 = dma.hbm_to_vmem [thread:$0]  %s321_s0, 192, %s14_s7, [#allocation3], %s234_s9, %s234_s9, %s235_s10  }
   0xd   :  { %229 = dma.done.wait [#allocation3], 192  }
   0xe   :  { %230 = vsyncadd [#allocation3], 4294967104  ;;  %v31_v0 = vlaneseq  ;;  %v23_v12 = vld [vmem:[#allocation2] sm:$0x3]  ;;  %v26_v13 = vld [vmem:[#allocation2 + $0x2] sm:$0x3] }
   0xf   :  { %v29_v14 = vld [vmem:[#allocation2 + $0x4] sm:$0x3]  ;;  %v236_v15 = vmov 1966171168   ;;  %vm237_vm4 = vmmov 1   ;;  %s238_s0 = smov [#allocation5]  }
  0x10   :  { %v32_v1 = vand.u32 127, %v31_v0  ;;  %v53_v2 = vshrl.u32 %v31_v0, 7  ;;  %v130_v16 = vunpack.c.l.s4 %v236_v15  ;;  %v24_v20 = vld [vmem:[#allocation2 + $0x6] sm:$0x3]  ;;  %v27_v21 = vld [vmem:[#allocation2 + $0x8] sm:$0x3] }
  0x11   :  { %v30_v27 = vld [vmem:[#allocation2 + $0xa] sm:$0x3]  ;;  %s171_s13 = sshll.u32 %s238_s0, 4  ;;  %vm162_vm13 = vcmp.lt.s32.totalorder %v31_v0, 256  ;;  %s172_s13 = int_to_ptr.vmem [resolvable:$true] %s171_s13 }
  0x12   :  { %v33_v3 = vadd.s32 128, %v32_v1  ;;  %v34_v4 = vand.u32 1, %v32_v1  ;;  %v38_v5 = vand.u32 16, %v32_v1  ;;  %v54_v6 = vsub.s32 0, %v53_v2  ;;  %s209_s14 = scalar_lea.vmem %s172_s13, 64  ;;  %p214_p6 = scmp.lt.s32.totalorder %s172_s13, %s172_s13 }
  0x13   :  { %v58_v7 = vsub.s32 1, %v53_v2  ;;  %v131_v35 = vunpack.c.0.s8 %v130_v16  ;;  %p210_p5 = scmp.ne.s32.totalorder %s172_s13, %s209_s14  ;;  %p215_p7 = scmp.lt.s32.totalorder %s209_s14, %s209_s14 }
  0x14   :  { %v35_v8 = vand.u32 1, %v33_v3  ;;  %vm255_vm0 = vcmp.eq.s32.totalorder %v34_v4, 0  ;;  %v39_v10 = vand.u32 16, %v33_v3  ;;  %vm259_vm1 = vcmp.eq.s32.totalorder %v38_v5, 0 }
  0x15   :  { %vm274_vm5 = vmxor %vm259_vm1, %vm237_vm4  ;;  %v55_v23 = vrot.slane %v23_v12, %v54_v6  ;;  %v59_v24 = vrot.slane %v23_v12, %v58_v7  ;;  %v77_v25 = vrot.slane %v26_v13, %v54_v6  ;;  %v81_v26 = vrot.slane %v26_v13, %v58_v7  ;;  %p216_p8 = por %p215_p7, %p214_p6 }
  0x16   :  { %vm263_vm2 = vcmp.eq.s32.totalorder %v35_v8, 0  ;;  %vm267_vm3 = vcmp.eq.s32.totalorder %v39_v10, 0  ;;  %vm288_vm7 = vmxor %vm255_vm0, %vm237_vm4  ;;  %v63_v29 = vrot.slane %v24_v20, %v54_v6  ;;  %v67_v30 = vrot.slane %v24_v20, %v58_v7 }
  0x17   :  { %vm281_vm6 = vmxor %vm267_vm3, %vm237_vm4  ;;  %v85_v31 = vrot.slane %v27_v21, %v54_v6  ;;  %v89_v32 = vrot.slane %v27_v21, %v58_v7  ;;  %v103_v34 = vrot.slane %v29_v14, %v54_v6  ;;  %v111_v36 = vrot.slane %v30_v27, %v54_v6  ;;  %p217_p9 = pnand %p216_p8, %p210_p5 }
  0x18   :  { %vm295_vm8 = vmxor %vm263_vm2, %vm237_vm4  ;;  %v107_v37 = vrot.slane %v29_v14, %v58_v7  ;;  %v115_v38 = vrot.slane %v30_v27, %v58_v7  ;;  %v134_v44 = vsub.s32 %v131_v35, %v53_v2 }
  0x19   :  { %vm46_vm9 = vmand %vm259_vm1, %vm255_vm0 }
  0x1a   :  { %vm47_vm10 = vmand %vm267_vm3, %vm263_vm2  ;;  %v94_v39 = vsel %vm46_vm9, %v55_v23, %v77_v25  ;;  %v96_v40 = vsel %vm46_vm9, %v63_v29, %v85_v31 }
  0x1b   :  { %vm48_vm11 = vmand %vm274_vm5, %vm288_vm7  ;;  %v95_v41 = vsel %vm47_vm10, %v59_v24, %v81_v26  ;;  %v97_v42 = vsel %vm47_vm10, %v67_v30, %v89_v32 }
  0x1c   :  { %vm49_vm12 = vmand %vm281_vm6, %vm295_vm8  ;;  %v120_v43 = vsel %vm48_vm11, %v103_v34, %v94_v39  ;;  %v122_v45 = vsel %vm48_vm11, %v111_v36, %v96_v40 }
  0x1d   :  { %v121_v46 = vsel %vm49_vm12, %v107_v37, %v95_v41  ;;  %v123_v47 = vsel %vm49_vm12, %v115_v38, %v97_v42 }
  0x1e   :  { %v128_v48 = vcombine.low %v120_v43, %v121_v46  ;;  %v143_v49 = vcombine.low %v122_v45, %v123_v47 }
  0x20   :  { %v135_v50 = vrot.slane %v128_v48, %v134_v44  ;;  %v150_v51 = vrot.slane %v143_v49, %v134_v44 }
  0x22   :  { %v142_v52 = vrot.slane %v135_v50, %v134_v44  ;;  %v157_v53 = vrot.slane %v150_v51, %v134_v44 }
  0x24   :  { %164 = vst.msk [vmem:[#allocation5] sm:$0x3] %vm162_vm13, %v142_v52  ;;  %165 = vst.msk [vmem:[#allocation5 + $0x2] sm:$0x3] %vm162_vm13, %v157_v53 }
  0x25   :  { %220 = shalt.err (!%p217_p9)
}
  0x26   :  { %177 = dma.vmem_to_hbm [thread:$0]  %s172_s13, 64, %s322_s1, [#allocation4], %s234_s9, %s234_s9, %s235_s10  }
  0x27   :  { %231 = dma.done.wait [#allocation4], 64  }
  0x28   :  { %232 = vsyncadd [#allocation4], 4294967232 }
  0x29   :  { %181 = vsyncpa [#allocation3], 1 }
  0x2a   :  { %182 = vsyncpa [#allocation4], 1 }

</bundles_post_ra>
